<compile_context>
chip_gen: v6e
topology: v6e:2x2x1
jax: 0.10.0
libtpu: 0.0.40
codegen_flags: <defaults>
</compile_context>

<pallas_src>
import functools
import math

import jax
import jax.numpy as jnp
from jax import lax
from jax.experimental import pallas as pl
from jax.experimental.pallas import tpu as pltpu


_LANES = 128
_MAX_TILE_ROWS = 1024                   # 512-1024-row tiles ~= HBM roofline
_MIN_GRID_STEPS = 4                     # keep megacore sharding + DMA overlap
_DEFAULT_VMEM_LIMIT = 38 * 1024 * 1024  # ~60% of v7x's 64 MiB per-TC VMEM
_SMALL_TILE_BYTES = 512 * 1024          # below this, request 3-deep buffering


def _round_up(x, m):
    return ((x + m - 1) // m) * m


def _sublane_multiple(dtype):
    # Rows per fully-packed sublane group: f32 -> 8, bf16 -> 16, int8/fp8 -> 32.
    itemsize = jnp.dtype(dtype).itemsize
    return 8 * max(1, 4 // max(itemsize, 1))


def _vmem_limit_bytes():
    """~60% of this generation's per-core VMEM (fallback is safe on v7x)."""
    try:
        info = pltpu.get_tpu_info()
        cap = getattr(info, "vmem_capacity_bytes", None)
        if cap:
            return int(cap * 0.6)
    except Exception:
        pass
    return _DEFAULT_VMEM_LIMIT


def _choose_tile_rows(n_rows, n_classes, stream_bytes_per_row, vmem_limit, sublane):
    """Row-tile size from the real per-row VMEM traffic.

    Per tile row we account for:
      * 2 pipeline buffers x streamed input bytes, and
      * ~3 tile-sized f32 intermediates (shifted logits, exp, products) that
        must materialize in VMEM (a tile never fits in 64 vregs).
    """
    bytes_per_row = 2 * stream_bytes_per_row + 3 * 4 * n_classes
    budget = int(vmem_limit * 0.75)          # headroom for compiler temps/output
    rows = budget // max(bytes_per_row, 1)
    rows = min(rows, _MAX_TILE_ROWS)
    # Keep at least _MIN_GRID_STEPS grid steps when the batch allows it
    # (v7x megacore sharding of the "parallel" axis + DMA/compute overlap).
    rows_for_steps = _round_up(pl.cdiv(n_rows, _MIN_GRID_STEPS), sublane)
    rows = min(rows, rows_for_steps)
    rows = max(sublane, (rows // sublane) * sublane)
    return rows


def _input_spec(block_shape, index_map, deep_buffer):
    """BlockSpec with optional 3-deep pipelining for tiny per-step tiles."""
    if deep_buffer and hasattr(pl, "Buffered"):
        try:
            return pl.BlockSpec(block_shape, index_map,
                                pipeline_mode=pl.Buffered(3))
        except TypeError:   # pipeline_mode not supported in this JAX version
            pass
    return pl.BlockSpec(block_shape, index_map)


def _kl_float_kernel(out_ref, tgt_ref, part_ref, *, n_valid, tile_rows):
    """One (tile_rows, C) tile of rows; float (logit) targets.

    Writes this tile's partial KL sum broadcast over a lane-dense
    (1, 8, 128) output block.
    """
    i = pl.program_id(0)

    x = out_ref[...].astype(jnp.float32)   # (TM, C) output logits
    t = tgt_ref[...].astype(jnp.float32)   # (TM, C) target logits

    # log_softmax(x) pieces (class axis = last / lane dim).
    x_max = jnp.max(x, axis=-1, keepdims=True)
    x_sh = x - x_max
    x_lse = jnp.log(jnp.sum(jnp.exp(x_sh), axis=-1, keepdims=True))

    # softmax(t) pieces (exp computed once; logs only on per-row scalars).
    t_max = jnp.max(t, axis=-1, keepdims=True)
    t_sh = t - t_max
    t_exp = jnp.exp(t_sh)
    t_sum = jnp.sum(t_exp, axis=-1, keepdims=True)

    # Fused per-row KL:
    #   sum_c q*(log q - log p) = (1/t_sum)*sum_c t_exp*(t_sh - x_sh)
    #                             + x_lse - log(t_sum)
    s = jnp.sum(t_exp * (t_sh - x_sh), axis=-1, keepdims=True)
    # Exact reciprocal: it scales the whole per-row KL sum.
    row_loss = s * pl.reciprocal(t_sum, approx=False) + x_lse - jnp.log(t_sum)

    # Mask tail rows of the last (partial) tile BEFORE the cross-row sum.
    row_id = i * tile_rows + lax.broadcasted_iota(jnp.int32, (tile_rows, 1), 0)
    row_loss = jnp.where(row_id < n_valid, row_loss, 0.0)

    partial = jnp.sum(row_loss, axis=0, keepdims=True)            # (1, 1)
    part_ref[...] = jnp.broadcast_to(partial, (1, 8, _LANES))


def _kl_label_kernel(out_ref, lbl_ref, part_ref, *, n_valid, tile_rows, n_classes):
    """One (tile_rows, C) tile; integer class labels (closed-form one-hot path).

    softmax(one_hot(label)) has exactly two values:
      q_hit  = e / (e + C - 1)   at the label class
      q_miss = 1 / (e + C - 1)   everywhere else
    so KL reduces to a per-row gather of log_p at the label plus a constant.
    Precondition: labels lie in [0, C) (same as torch one_hot).
    """
    i = pl.program_id(0)

    x = out_ref[...].astype(jnp.float32)   # (TM, C) output logits
    lbl = lbl_ref[...]                     # (TM, 1) int32 labels

    x_max = jnp.max(x, axis=-1, keepdims=True)
    x_sh = x - x_max
    x_lse = jnp.log(jnp.sum(jnp.exp(x_sh), axis=-1, keepdims=True))  # (TM, 1)

    lane = lax.broadcasted_iota(jnp.int32, x.shape, 1)               # (TM, C)
    x_sh_lbl = jnp.sum(jnp.where(lane == lbl, x_sh, 0.0), axis=-1, keepdims=True)
    x_sh_sum = jnp.sum(x_sh, axis=-1, keepdims=True)

    e = math.e
    denom = e + n_classes - 1.0
    q_hit = e / denom
    q_miss = 1.0 / denom
    neg_entropy = (q_hit * math.log(q_hit)
                   + (n_classes - 1) * q_miss * math.log(q_miss))

    lp_lbl = x_sh_lbl - x_lse                      # log_p at the label
    lp_sum = x_sh_sum - n_classes * x_lse          # sum_c log_p
    row_loss = neg_entropy - q_hit * lp_lbl - q_miss * (lp_sum - lp_lbl)

    row_id = i * tile_rows + lax.broadcasted_iota(jnp.int32, (tile_rows, 1), 0)
    row_loss = jnp.where(row_id < n_valid, row_loss, 0.0)

    partial = jnp.sum(row_loss, axis=0, keepdims=True)            # (1, 1)
    part_ref[...] = jnp.broadcast_to(partial, (1, 8, _LANES))


def kl_divergence_loss(outputs, targets, *, tile_rows=None):
    """Pallas implementation of KLDivergenceLoss.forward for (N, C) inputs.

    `targets` is either (N, C) float logits or (N,) integer class labels in
    [0, C) (mirrors the `targets.dtype == torch.long` branch of the module).
    """
    N, C = outputs.shape
    int_labels = jnp.issubdtype(targets.dtype, jnp.integer)

    out_isz = jnp.dtype(outputs.dtype).itemsize
    if int_labels:
        # One (TM, C) logits tile + the (TM, 1) int32 labels block, which pads
        # to 128 lanes in VMEM (512 B/row of VMEM for 4 B of useful data).
        stream_bytes_per_row = out_isz * C + _LANES * 4
        sublane = _sublane_multiple(outputs.dtype)
    else:
        stream_bytes_per_row = (out_isz + jnp.dtype(targets.dtype).itemsize) * C
        sublane = max(_sublane_multiple(outputs.dtype),
                      _sublane_multiple(targets.dtype))

    vmem_limit = _vmem_limit_bytes()

    # Degenerate tiny-batch case: pad rows up to one sublane group
    # (tail masking keeps the math exact).
    n_rows = N
    if N < sublane:
        pad = sublane - N
        outputs = jnp.pad(outputs, ((0, pad), (0, 0)))
        if int_labels:
            targets = jnp.pad(targets, (0, pad))
        else:
            targets = jnp.pad(targets, ((0, pad), (0, 0)))
        n_rows = sublane

    if tile_rows is None:
        tile_rows = _choose_tile_rows(n_rows, C, stream_bytes_per_row,
                                      vmem_limit, sublane)
    else:
        tile_rows = max(sublane, (int(tile_rows) // sublane) * sublane)

    num_tiles = pl.cdiv(n_rows, tile_rows)
    deep_buffer = (tile_rows * stream_bytes_per_row < _SMALL_TILE_BYTES
                   and num_tiles >= 3)

    # Lane-dense per-tile partial sums; reduced (densely) in JAX afterwards.
    out_shape = jax.ShapeDtypeStruct((num_tiles, 8, _LANES), jnp.float32)
    out_spec = pl.BlockSpec((1, 8, _LANES), lambda i: (i, 0, 0))
    cparams = pltpu.CompilerParams(
        dimension_semantics=("parallel",),       # row tiles are independent
        vmem_limit_bytes=vmem_limit)

    if int_labels:
        labels = targets.reshape(n_rows, 1).astype(jnp.int32)
        kernel = functools.partial(_kl_label_kernel, n_valid=N,
                                   tile_rows=tile_rows, n_classes=C)
        partials = pl.pallas_call(
            kernel,
            out_shape=out_shape,
            grid_spec=pltpu.PrefetchScalarGridSpec(
                num_scalar_prefetch=0,
                grid=(num_tiles,),
                in_specs=[
                    _input_spec((tile_rows, C), lambda i: (i, 0), deep_buffer),
                    _input_spec((tile_rows, 1), lambda i: (i, 0), deep_buffer),
                ],
                out_specs=out_spec),
            compiler_params=cparams,
        )(outputs, labels)
    else:
        assert targets.shape == (n_rows, C)
        kernel = functools.partial(_kl_float_kernel, n_valid=N,
                                   tile_rows=tile_rows)
        partials = pl.pallas_call(
            kernel,
            out_shape=out_shape,
            grid_spec=pltpu.PrefetchScalarGridSpec(
                num_scalar_prefetch=0,
                grid=(num_tiles,),
                in_specs=[
                    _input_spec((tile_rows, C), lambda i: (i, 0), deep_buffer),
                    _input_spec((tile_rows, C), lambda i: (i, 0), deep_buffer),
                ],
                out_specs=out_spec),
            compiler_params=cparams,
        )(outputs, targets)

    # Every lane of each (8, 128) block holds the same partial, so a dense sum
    # divided by 1024 avoids a strided [:, 0, 0] gather in the epilogue.
    return jnp.sum(partials) * (1.0 / (8.0 * _LANES)) / jnp.float32(N)


def _reference(outputs, targets):
    """Pure-JAX reference mirroring the PyTorch module."""
    if jnp.issubdtype(targets.dtype, jnp.integer):
        targets = jax.nn.one_hot(targets, outputs.shape[1], dtype=jnp.float32)
    outputs = outputs.astype(jnp.float32)
    targets = targets.astype(jnp.float32)
    log_p = jax.nn.log_softmax(outputs, axis=1)
    q = jax.nn.softmax(targets, axis=1)
    log_q = jax.nn.log_softmax(targets, axis=1)
    return jnp.sum(q * (log_q - log_p)) / outputs.shape[0]


if __name__ == "__main__":
    key = jax.random.PRNGKey(0)
    k1, k2, k3, k4, k5, k6, k7, k8, k9 = jax.random.split(key, 9)

    # Config A: tile-friendly shape (16 rows x 128 classes, f32).
    N1, C1 = 16, 128
    out1 = jax.random.normal(k1, (N1, C1), dtype=jnp.float32)
    tgt1 = jax.random.normal(k2, (N1, C1), dtype=jnp.float32)
    lbl1 = jax.random.randint(k3, (N1,), 0, C1, dtype=jnp.int32)

    loss_f1 = kl_divergence_loss(out1, tgt1)
    jax.block_until_ready(loss_f1)
    loss_i1 = kl_divergence_loss(out1, lbl1)
    jax.block_until_ready(loss_i1)
    assert jnp.allclose(loss_f1, _reference(out1, tgt1), rtol=1e-5, atol=1e-4), (
        loss_f1, _reference(out1, tgt1))
    assert jnp.allclose(loss_i1, _reference(out1, lbl1), rtol=1e-5, atol=1e-4), (
        loss_i1, _reference(out1, lbl1))

    # Config B: ragged shape — exercises tail-row masking and C != 128.
    N2, C2 = 13, 37
    out2 = jax.random.normal(k4, (N2, C2), dtype=jnp.float32)
    tgt2 = jax.random.normal(k5, (N2, C2), dtype=jnp.float32)
    lbl2 = jax.random.randint(k6, (N2,), 0, C2, dtype=jnp.int32)

    loss_f2 = kl_divergence_loss(out2, tgt2)
    jax.block_until_ready(loss_f2)
    loss_i2 = kl_divergence_loss(out2, lbl2)
    jax.block_until_ready(loss_i2)
    assert jnp.allclose(loss_f2, _reference(out2, tgt2), rtol=1e-5, atol=1e-4), (
        loss_f2, _reference(out2, tgt2))
    assert jnp.allclose(loss_i2, _reference(out2, lbl2), rtol=1e-5, atol=1e-4), (
        loss_i2, _reference(out2, lbl2))

    # Config C: bf16 inputs — exercises dtype-aware tile sizing (16-row sublane
    # multiple) and in-kernel f32 upcast without wrapper pre-cast.
    N3, C3 = 32, 128
    out3 = jax.random.normal(k7, (N3, C3), dtype=jnp.bfloat16)
    tgt3 = jax.random.normal(k8, (N3, C3), dtype=jnp.bfloat16)
    lbl3 = jax.random.randint(k9, (N3,), 0, C3, dtype=jnp.int32)

    loss_f3 = kl_divergence_loss(out3, tgt3)
    jax.block_until_ready(loss_f3)
    loss_i3 = kl_divergence_loss(out3, lbl3)
    jax.block_until_ready(loss_i3)
    assert jnp.allclose(loss_f3, _reference(out3, tgt3), rtol=1e-5, atol=1e-4), (
        loss_f3, _reference(out3, tgt3))
    assert jnp.allclose(loss_i3, _reference(out3, lbl3), rtol=1e-5, atol=1e-4), (
        loss_i3, _reference(out3, lbl3))

    print("KERNEL_OK")
</pallas_src>

<mosaic_0001>
module attributes {stable_mosaic.version = 11 : i64} {
  func.func @_kl_float_kernel(%arg0: i32, %arg1: memref<8x128xf32, #tpu.memory_space<vmem>>, %arg2: memref<8x128xf32, #tpu.memory_space<vmem>>, %arg3: memref<1x8x128xf32, #tpu.memory_space<vmem>>) attributes {dimension_semantics = [#tpu.dimension_semantics<parallel>], iteration_bounds = array<i64: 2>, scalar_prefetch = 0 : i64, scratch_operands = 0 : i64, tpu.core_type = #tpu.core_type<tc>, window_params = [{transform_indices = @transform_0, window_bounds = array<i64: 8, 128>}, {transform_indices = @transform_1, window_bounds = array<i64: 8, 128>}, {transform_indices = @transform_2, window_bounds = array<i64: 1, 8, 128>}]} {
    %c0 = arith.constant 0 : index
    %c0_0 = arith.constant 0 : index
    %0 = vector.load %arg1[%c0, %c0_0] : memref<8x128xf32, #tpu.memory_space<vmem>>, vector<8x128xf32>
    %c0_1 = arith.constant 0 : index
    %c0_2 = arith.constant 0 : index
    %1 = vector.load %arg2[%c0_1, %c0_2] : memref<8x128xf32, #tpu.memory_space<vmem>>, vector<8x128xf32>
    %cst = arith.constant dense<0xFF800000> : vector<8xf32>
    %2 = vector.multi_reduction <maximumf>, %0, %cst [1] : vector<8x128xf32> to vector<8xf32>
    %3 = vector.shape_cast %2 : vector<8xf32> to vector<8x1xf32>
    %4 = vector.broadcast %3 : vector<8x1xf32> to vector<8x128xf32>
    %5 = arith.subf %0, %4 : vector<8x128xf32>
    %6 = math.exp %5 : vector<8x128xf32>
    %cst_3 = arith.constant dense<0.000000e+00> : vector<8xf32>
    %7 = vector.multi_reduction <add>, %6, %cst_3 [1] : vector<8x128xf32> to vector<8xf32>
    %8 = vector.shape_cast %7 : vector<8xf32> to vector<8x1xf32>
    %9 = math.log %8 : vector<8x1xf32>
    %cst_4 = arith.constant dense<0xFF800000> : vector<8xf32>
    %10 = vector.multi_reduction <maximumf>, %1, %cst_4 [1] : vector<8x128xf32> to vector<8xf32>
    %11 = vector.shape_cast %10 : vector<8xf32> to vector<8x1xf32>
    %12 = vector.broadcast %11 : vector<8x1xf32> to vector<8x128xf32>
    %13 = arith.subf %1, %12 : vector<8x128xf32>
    %14 = math.exp %13 : vector<8x128xf32>
    %cst_5 = arith.constant dense<0.000000e+00> : vector<8xf32>
    %15 = vector.multi_reduction <add>, %14, %cst_5 [1] : vector<8x128xf32> to vector<8xf32>
    %16 = vector.shape_cast %15 : vector<8xf32> to vector<8x1xf32>
    %17 = arith.subf %13, %5 : vector<8x128xf32>
    %18 = arith.mulf %14, %17 : vector<8x128xf32>
    %cst_6 = arith.constant dense<0.000000e+00> : vector<8xf32>
    %19 = vector.multi_reduction <add>, %18, %cst_6 [1] : vector<8x128xf32> to vector<8xf32>
    %20 = vector.shape_cast %19 : vector<8xf32> to vector<8x1xf32>
    %21 = tpu.reciprocal %16 : vector<8x1xf32> -> vector<8x1xf32>
    %22 = arith.mulf %20, %21 : vector<8x1xf32>
    %23 = arith.addf %22, %9 : vector<8x1xf32>
    %24 = math.log %16 : vector<8x1xf32>
    %25 = arith.subf %23, %24 : vector<8x1xf32>
    %c8_i32 = arith.constant 8 : i32
    %26 = arith.muli %arg0, %c8_i32 : i32
    %27 = tpu.iota {dimensions = array<i32: 0>} : vector<8x1xi32>
    %28 = vector.broadcast %26 : i32 to vector<8x1xi32>
    %29 = arith.addi %28, %27 : vector<8x1xi32>
    %c16_i32 = arith.constant 16 : i32
    %30 = vector.broadcast %c16_i32 : i32 to vector<8x1xi32>
    %31 = arith.cmpi slt, %29, %30 : vector<8x1xi32>
    %cst_7 = arith.constant 0.000000e+00 : f32
    %32 = vector.broadcast %cst_7 : f32 to vector<8x1xf32>
    %33 = arith.select %31, %25, %32 : vector<8x1xi1>, vector<8x1xf32>
    %cst_8 = arith.constant dense<0.000000e+00> : vector<1xf32>
    %34 = vector.multi_reduction <add>, %33, %cst_8 [0] : vector<8x1xf32> to vector<1xf32>
    %35 = vector.shape_cast %34 : vector<1xf32> to vector<1x1xf32>
    %36 = vector.shape_cast %35 : vector<1x1xf32> to vector<1x1x1xf32>
    %37 = vector.broadcast %36 : vector<1x1x1xf32> to vector<1x8x128xf32>
    %c0_9 = arith.constant 0 : index
    %c0_10 = arith.constant 0 : index
    %c0_11 = arith.constant 0 : index
    %38 = vector.load %arg3[%c0_9, %c0_10, %c0_11] : memref<1x8x128xf32, #tpu.memory_space<vmem>>, vector<1x8x128xf32>
    tpu.vector_store %arg3[%c0_9, %c0_10, %c0_11], %37 {strides = array<i32>} : memref<1x8x128xf32, #tpu.memory_space<vmem>>, vector<1x8x128xf32>,
    return
  }
  func.func @transform_0(%arg0: i32) -> (i32, i32) {
    %c0_i32 = arith.constant 0 : i32
    %c0_i32_0 = arith.constant 0 : i32
    return %arg0, %c0_i32 : i32, i32
  }
  func.func @transform_1(%arg0: i32) -> (i32, i32) {
    %c0_i32 = arith.constant 0 : i32
    %c0_i32_0 = arith.constant 0 : i32
    return %arg0, %c0_i32 : i32, i32
  }
  func.func @transform_2(%arg0: i32) -> (i32, i32, i32) {
    %c0_i32 = arith.constant 0 : i32
    %c0_i32_0 = arith.constant 0 : i32
    %c0_i32_1 = arith.constant 0 : i32
    return %arg0, %c0_i32, %c0_i32_0 : i32, i32, i32
  }
}

</mosaic_0001>

<bundles_post_ra>
// kernel: tpu_custom_call.1
= control target key start
LH: loop header
LB: loop body
LE: loop exit
PB: predicated region body
PF: predicated region fallthrough
CT: control target
= control target key end

     0   :  { %7 = vsyncpa [#allocation3], 0  ;;  %s766_s0 = inlined_call_operand.hbm [shape: f32[16,128], index: 0, kind: input, shape index: {}]   ;;  %s767_s1 = inlined_call_operand.hbm [shape: f32[16,128], index: 1, kind: input, shape index: {}]   ;;  %s768_s2 = inlined_call_operand.hbm [shape: f32[2,8,128], index: 2, kind: output, shape index: {}]  }
   0x1   :  { %9 = vsyncpa [#allocation3 + $0x1], 0 }
   0x2   :  { %10 = vsyncpa [#allocation6], 0 }
   0x3   :  { %12 = vsyncpa [#allocation6 + $0x1], 0 }
   0x4   :  { %13 = vsyncpa [#allocation4], 0 }
   0x5   :  { %15 = vsyncpa [#allocation4 + $0x1], 0  ;;  %s566_s9 = smov 0   ;;  %s568_s10 = smov 0  }
   0x6   :  { %s570_s11 = smov 0   ;;  %s572_s12 = smov 0  }
   0x7 LB: > { %s587_s13 = sadd.s32 4294967295, %s546_s12   ;;  %s345_s14 = sadd.s32 4294967294, %s546_s12   ;;  %s546_s12 = sphi %s572_s12, %s787_s12   ;;  %s542_s11 = sphi %s570_s11, %s786_s11   ;;  %s538_s10 = sphi %s568_s10, %s785_s10   ;;  %s534_s9 = sphi %s566_s9, %s784_s9  }
   0x8   : > { %s591_s15 = sadd.s32 1, %s546_s12   ;;  %s28_s16 = sadd.s32 1, %s542_s11 }
   0x9   : > { %s25_s17 = ssub.s32 %s546_s12, %s591_s15  ;;  %p35_p0 = scmp.ne.s32.totalorder %s542_s11, %s538_s10 }
   0xa   : > { %p26_p1 = scmp.eq.s32.totalorder %s25_s17, 0  ;;  %p36_p2 = scmp.eq.s32.totalorder %s546_s12, 0 }
   0xb   : > { %p41_p3 = scmp.ne.s32.totalorder %s538_s10, %s534_s9  ;;  %p42_p4 = scmp.eq.s32.totalorder %s587_s13, 0 }
   0xc   : > { %s603_s18 = scalar_select %p26_p1, %s542_s11, %s28_s16  }
   0xd   : > { %p605_p5 = por %p36_p2, %p35_p0  ;;  %p609_p6 = por %p42_p4, %p41_p3 }
   0xe   : > { %p91_p7 = scmp.eq.s32.totalorder %s587_s13, 1  ;;  %p97_p8 = scmp.eq.s32.totalorder %s345_s14, 1 }
   0xf   : > { %s772_s20 = scalar_select %p609_p6, 1, 0 }
  0x10   : > { %p378_p10 = scmp.lt.s32.totalorder %s546_s12, 2  ;;  %p616_p11 = por %p91_p7, %p35_p0 }
  0x11   : > { %p620_p12 = por %p97_p8, %p41_p3  ;;  %s625_s23 = sand.u32 1, %s542_s11  }
  0x12   : > { %s773_s21 = scalar_select %p616_p11, 1, 0 }
  0x13   : > { %s774_s22 = scalar_select %p620_p12, 1, 0 }
  0x14   : > { %s349_s24 = sshll.u32 %s546_s12, 7  ;;  %s348_s25 = sshll.u32 %s625_s23, 3 }
  0x15   : > { %s634_s28 = scalar_lea.hbm %s766_s0, %s349_s24  ;;  %s121_s29 = scalar_lea.vmem [#allocation2], %s348_s25 }
  0x16   : > { %s128_s30 = sshll.u32 %s121_s29, 4  ;;  %p640_p13 = pnand %p378_p10, %p605_p5  ;;  %s644_s30 = int_to_ptr.vmem [resolvable:$true] %s128_s30 }
  0x17   : > { %s118_s4 = scalar_lea.sflag [#allocation3], %s625_s23  ;;  %s422_s5 = scalar_lea.hbm %s634_s28, 128 }
  0x18   : > { %p423_p2 = scmp.ne.s32.totalorder %s634_s28, %s422_s5  ;;  %p424_p3 = pneg %p640_p13 }
  0x19   : > { %s427_s8 = scalar_lea.hbm %s766_s0, 256  ;;  %p428_p5 = scmp.lt.s32.totalorder %s634_s28, %s766_s0 }
  0x1a   : > { %p425_p4 = pnand %p424_p3, %p423_p2  ;;  %p429_p8 = scmp.lt.s32.totalorder %s427_s8, %s422_s5 }
  0x1c   : > { %p426_p7 = pneg %p425_p4  ;;  %p430_p10 = por %p429_p8, %p428_p5 }
  0x1e   : > { %p431_p9 = pnand %p430_p10, %p426_p7 }
  0x20   : > { %434 = shalt.err (!%p431_p9)
}
  0x21   : > { %s435_s17 = scalar_lea.vmem %s644_s30, 128  ;;  %s548_s19 = smov [#allocation2]  }
  0x22   : > { %p436_p0 = scmp.ne.s32.totalorder %s644_s30, %s435_s17  ;;  %s440_s26 = sshll.u32 %s548_s19, 4  ;;  %s441_s26 = int_to_ptr.vmem [resolvable:$false] %s440_s26 }
  0x23   : > { %s442_s27 = scalar_lea.vmem %s441_s26, 256  ;;  %p443_p1 = scmp.lt.s32.totalorder %s644_s30, %s441_s26 }
  0x24   : > { %p438_p2 = pnand %p436_p0, %p424_p3  ;;  %p444_p12 = scmp.lt.s32.totalorder %s442_s27, %s435_s17 }
  0x26   : > { %p439_p4 = pneg %p438_p2  ;;  %p445_p11 = por %p444_p12, %p443_p1 }
  0x28   : > { %p446_p5 = pnand %p445_p11, %p439_p4 }
  0x2a   : > { %449 = shalt.err (!%p446_p5)
}
  0x2b   : > { %370 = dma.hbm_to_vmem [thread:$0]  (!%p640_p13), %s634_s28, 128, %s644_s30, %s118_s4  }
  0x2c   : > { %p776_p9 = scmp.lt.s32.totalorder %s546_s12, 3  ;;  %p777_p0 = scmp.ge.s32.totalorder %s546_s12, 1 }
  0x2d   : > { %s686_s7 = scalar_lea.hbm %s767_s1, %s349_s24  ;;  %s139_s8 = scalar_lea.vmem [#allocation5], %s348_s25 }
  0x2e   : > { %p677_p7 = pnand %p777_p0, %p776_p9  ;;  %s146_s14 = sshll.u32 %s139_s8, 4  ;;  %s147_s14 = int_to_ptr.vmem [resolvable:$true] %s146_s14 }
  0x2f   : > { %s136_s28 = scalar_lea.sflag [#allocation6], %s625_s23  ;;  %s450_s30 = scalar_lea.hbm %s686_s7, 128 }
  0x30   : > { %s778_s29 = scalar_select %p677_p7, 1, 0 }
  0x31   : > { %p451_p11 = scmp.ne.s32.totalorder %s686_s7, %s450_s30  ;;  %s455_s17 = scalar_lea.hbm %s767_s1, 256 }
  0x32   : > { %p456_p8 = scmp.lt.s32.totalorder %s686_s7, %s767_s1  ;;  %p457_p10 = scmp.lt.s32.totalorder %s455_s17, %s450_s30 }
  0x33   : > { %p453_p12 = pnand %p451_p11, %p424_p3 }
  0x34   : > { %p458_p2 = por %p457_p10, %p456_p8 }
  0x35   : > { %p454_p1 = pneg %p453_p12 }
  0x37   : > { %p459_p4 = pnand %p458_p2, %p454_p1 }
  0x39   : > { %462 = shalt.err (!%p459_p4)
}
  0x3a   : > { %s463_s25 = scalar_lea.vmem %s147_s14, 128  ;;  %s549_s23 = smov [#allocation5]  }
  0x3b   : > { %p464_p5 = scmp.ne.s32.totalorder %s147_s14, %s463_s25  ;;  %s468_s26 = sshll.u32 %s549_s23, 4  ;;  %s469_s26 = int_to_ptr.vmem [resolvable:$false] %s468_s26 }
  0x3c   : > { %s470_s27 = scalar_lea.vmem %s469_s26, 256  ;;  %p471_p11 = scmp.lt.s32.totalorder %s147_s14, %s469_s26 }
  0x3d   : > { %p466_p9 = pnand %p464_p5, %p424_p3  ;;  %p472_p12 = scmp.lt.s32.totalorder %s470_s27, %s463_s25 }
  0x3f   : > { %p467_p0 = pneg %p466_p9  ;;  %p473_p6 = por %p472_p12, %p471_p11 }
  0x41   : > { %p474_p7 = pnand %p473_p6, %p467_p0 }
  0x43   : > { %477 = shalt.err (!%p474_p7)
}
  0x44   : > { %373 = dma.hbm_to_vmem [thread:$0]  (!%p640_p13), %s686_s7, 128, %s147_s14, %s136_s28  }
  0x45   : > { %p779_p1 = scmp.ne.s32.totalorder %s778_s29, 0 }
  0x46   : > { %s712_s5 = sand.u32 (!%p779_p1), 1, %s538_s10   ;;  %p780_p6 = scmp.ne.s32.totalorder (!%p779_p1), %s772_s20, 0 }
  0x47   : > { %155 = sbr.rel (%p779_p1) target bundleno = 424 (0x1a8), region = 28  ;;  %s715_s6 = sshll.u32 (!%p779_p1), %s712_s5, 3 }
  0x48   : > { %s158_s8 = scalar_lea.sflag (!%p779_p1), [#allocation3], %s712_s5  ;;  %s161_s30 = scalar_lea.vmem (!%p779_p1), [#allocation2], %s715_s6 }
  0x4c   : > { %521 = dma.done.wait (%p780_p6), %s158_s8, 128  }
  0x4d   : > { %523 = vsyncadd (%p780_p6), %s158_s8, 4294967168  ;;  %s167_s3 = scalar_lea.sflag [#allocation6], %s712_s5  ;;  %s170_s29 = scalar_lea.vmem [#allocation5], %s715_s6 }
  0x4e   : > { %525 = dma.done.wait (%p780_p6), %s167_s3, 128  }
  0x4f   : > { %527 = vsyncadd (%p780_p6), %s167_s3, 4294967168  ;;  %v196_v0 = vld [vmem:[%s161_s30] sm:$0xff]  ;;  %v197_v1 = vld [vmem:[%s170_s29] sm:$0xff]  ;;  %v225_v14 = vlaneseq  ;;  %s356_s20 = sshll.u32 %s587_s13, 3  ;;  %s358_s7 = sshll.u32 %s587_s13, 7 }
  0x50   : > { %198 = vmax.xlane.f32.xlu0 %v196_v0  ;;  %v227_v16 = vstv %s356_s20  ;;  %s195_s14 = scalar_lea.vmem [#allocation7], %s715_s6  ;;  %s250_s17 = scalar_lea.hbm %s768_s2, %s358_s7 }
  0x51   : > { %v226_v15 = vshrl.u32 %v225_v14, 7  ;;  %s252_s28 = sshll.u32 %s195_s14, 4  ;;  %s239_s24 = scalar_lea.sflag [#allocation4], %s712_s5  ;;  %s253_s28 = int_to_ptr.vmem [resolvable:$true] %s252_s28 }
  0x52   : > { %s478_s19 = scalar_lea.vmem %s253_s28, 128  ;;  %p781_p3 = scmp.ne.s32.totalorder %s773_s21, 0 }
  0x53   : > { %v228_v19 = vadd.s32 %v227_v16, %v226_v15  ;;  %p479_p13 = scmp.ne.s32.totalorder %s253_s28, %s478_s19  ;;  %s550_s25 = smov [#allocation7]  }
  0x54   : > { %207 = vmax.xlane.f32.xlu0 %v197_v1  ;;  %s482_s23 = sshll.u32 %s550_s25, 4  ;;  %s483_s23 = int_to_ptr.vmem [resolvable:$false] %s482_s23 }
  0x55   : > { %vm229_vm0 = vcmp.lt.s32.totalorder %v228_v19, 16  ;;  %p480_p7 = pnand %p479_p13, %p781_p3  ;;  %s484_s13 = scalar_lea.vmem %s483_s23, 256 }
  0x56   : > { %p485_p10 = scmp.lt.s32.totalorder %s253_s28, %s483_s23  ;;  %p486_p2 = scmp.lt.s32.totalorder %s484_s13, %s478_s19 }
  0x57   : > { %p481_p8 = pneg %p480_p7 }
  0x58   : > { %p487_p4 = por %p486_p2, %p485_p10 }
  0x5a   : > { %p488_p5 = pnand %p487_p4, %p481_p8 }
  0xd9   : > { %v199_v2 = vpop.xlane.xlu0 %198 }
  0xda   : > { %v200_v3 = vsub.f32 %v196_v0, %v199_v2 }
  0xdc   : > { %v201_v4 = vmul.f32 1.442695, %v200_v3 }
  0xdd   : > { %v208_v5 = vpop.xlane.xlu0 %207 }
  0xde   : > { %v209_v6 = vsub.f32 %v197_v1, %v208_v5  ;;  %412 = vpow2.f32 %v201_v4 }
  0xe0   : > { %v210_v7 = vmul.f32 1.442695, %v209_v6  ;;  %v214_v9 = vsub.f32 %v209_v6, %v200_v3 }
  0xe2   : > { %414 = vpow2.f32 %v210_v7 }
  0xeb   : > { %v413_v8 = vpop.eup %412 }
  0xec   : > { %203 = vadd.xlane.f32.xlu1 %v413_v8 }
  0xef   : > { %v415_v10 = vpop.eup %414 }
  0xf0   : > { %212 = vadd.xlane.f32.xlu1 %v415_v10  ;;  %v215_v11 = vmul.f32 %v415_v10, %v214_v9 }
  0xf2   : > { %216 = vadd.xlane.f32.xlu0 %v215_v11 }
 0x175   : > { %v204_v12 = vpop.xlane.xlu1 %203 }
 0x176   : > { %416 = vlog2.f32 %v204_v12 }
 0x179   : > { %v213_v13 = vpop.xlane.xlu1 %212 }
 0x17a   : > { %418 = vrcp.f32 %v213_v13 }
 0x17b   : > { %420 = vlog2.f32 %v213_v13  ;;  %v217_v20 = vpop.xlane.xlu0 %216 }
 0x183   : > { %v417_v17 = vpop.eup %416 }
 0x184   : > { %v206_v22 = vmul.f32 0.6931472, %v417_v17 }
 0x187   : > { %v419_v18 = vpop.eup %418 }
 0x188   : > { %v421_v21 = vpop.eup %420  ;;  %v219_v23 = vmul.f32 %v419_v18, %v217_v20 }
 0x189   : > { %v222_v24 = vmul.f32 0.6931472, %v421_v21 }
 0x18a   : > { %v220_v25 = vadd.f32 %v219_v23, %v206_v22 }
 0x18c   : > { %v223_v26 = vsub.f32 %v220_v25, %v222_v24 }
 0x18e   : > { %v230_v27 = vsel %vm229_vm0, %v223_v26, 0.0 }
 0x18f   : > { %v231_v28 = vrot.slane %v230_v27, 4 }
 0x191   : > { %v232_v29 = vadd.f32 %v231_v28, %v230_v27 }
 0x193   : > { %v233_v30 = vrot.slane %v232_v29, 2 }
 0x195   : > { %v234_v31 = vadd.f32 %v233_v30, %v232_v29 }
 0x197   : > { %v235_v32 = vrot.slane %v234_v31, 1 }
 0x199   : > { %v236_v33 = vadd.f32 %v235_v32, %v234_v31 }
 0x19b   : > { %237 = vst [vmem:[%s195_s14] sm:$0xff] %v236_v33 }
 0x19c   : > { %491 = shalt.err (!%p488_p5)
}
 0x19d   : > { %s492_s26 = scalar_lea.hbm %s250_s17, 128  ;;  %s496_s6 = scalar_lea.hbm %s768_s2, 256 }
 0x19e   : > { %p493_p9 = scmp.ne.s32.totalorder %s250_s17, %s492_s26  ;;  %p497_p12 = scmp.lt.s32.totalorder %s250_s17, %s768_s2 }
 0x19f   : > { %p498_p1 = scmp.lt.s32.totalorder %s496_s6, %s492_s26 }
 0x1a0   : > { %p494_p0 = pnand %p493_p9, %p781_p3 }
 0x1a1   : > { %p499_p6 = por %p498_p1, %p497_p12 }
 0x1a2   : > { %p495_p11 = pneg %p494_p0 }
 0x1a4   : > { %p500_p13 = pnand %p499_p6, %p495_p11 }
 0x1a6   : > { %503 = shalt.err (!%p500_p13)
}
 0x1a7   : > { %365 = dma.vmem_to_hbm [thread:$0]  (%p781_p3), %s253_s28, 128, %s250_s17, %s239_s24  }
 0x1a8 PF: > { %s264_s3 = sand.u32 1, %s534_s9   ;;  %p782_p7 = scmp.ne.s32.totalorder %s774_s22, 0 }
 0x1a9   : > { %p783_p8 = scmp.ge.s32.totalorder %s546_s12, 2  ;;  %s265_s29 = scalar_lea.sflag [#allocation4], %s264_s3 }
 0x1ab   : > { %p375_p10 = pnand %p783_p8, %p782_p7 }
 0x1ad   : > { %p376_p2 = pneg %p375_p10 }
 0x1af   : > { %529 = dma.done.wait (%p376_p2), %s265_s29, 128  }
 0x1b0   : > { %531 = vsyncadd (%p376_p2), %s265_s29, 4294967168  ;;  %p18_p4 = scmp.ge.s32.totalorder %s591_s15, 4   ;;  %s784_s9 = smov %s538_s10 }
 0x1b1   : > { %s785_s10 = smov %s542_s11  ;;  %s786_s11 = smov %s603_s18 }
 0x1b2   : > { %s787_s12 = smov %s591_s15  ;;  %20 = sbr.rel (!%p18_p4) target bundleno = 7 (0x7), region = 86 }
 0x1b7   :  { %270 = vsyncpa [#allocation3], 1 }
 0x1b8   :  { %272 = vsyncpa [#allocation3 + $0x1], 1 }
 0x1b9   :  { %273 = vsyncpa [#allocation6], 1 }
 0x1ba   :  { %275 = vsyncpa [#allocation6 + $0x1], 1 }
 0x1bb   :  { %276 = vsyncpa [#allocation4], 1 }
 0x1bc   :  { %278 = vsyncpa [#allocation4 + $0x1], 1 }

</bundles_post_ra>
